<compile_context>
chip_gen: v6e
topology: v6e:2x2x1
jax: 0.10.0
libtpu: 0.0.40
codegen_flags: <defaults>
</compile_context>

<pallas_src>
import jax
import jax.numpy as jnp
import numpy as np
from jax.experimental import pallas as pl
from jax.experimental.pallas import tpu as pltpu


def _pick_tile_b(b_pad: int, target: int = 128) -> int:
    """Largest multiple of 8 that divides b_pad and is <= target."""
    best = 8
    t = 8
    while t <= min(b_pad, target):
        if b_pad % t == 0:
            best = t
        t += 8
    return best


def model_kernel(x_ref, asum_ref, bsum_ref, fcw_ref, bias_ref, out_ref):
    """One grid step over a TILE_B-tall slice of the batch axis.

    x_ref    : VMEM [TILE_B, D]   f32   flattened input rows for this tile
    asum_ref : VMEM [K, D]        f32   sum_i a[i, j, m]  (weight-only, hoisted)
    bsum_ref : VMEM [K, D]        f32   sum_i b[i, j, m]
    fcw_ref  : VMEM [D, C_PAD]    f32   fc weight, transposed + lane-padded
    bias_ref : VMEM [1, C_PAD]    f32   part1-folded effective bias
    out_ref  : VMEM [TILE_B, C_PAD] f32 output rows for this tile
    """
    x = x_ref[...]                                         # [TILE_B, D]
    k = asum_ref.shape[0]

    # part2[b, j] = sum_m cos((m+1)*x[b,j]) * a_sum[m,j] + sin(...) * b_sum[m,j]
    part2 = jnp.zeros_like(x)
    for m in range(k):                                     # k is tiny & static
        freq = jnp.float32(m + 1)
        xm = x * freq if m > 0 else x
        part2 = part2 + jnp.cos(xm) * asum_ref[m:m + 1, :] \
                      + jnp.sin(xm) * bsum_ref[m:m + 1, :]

    # Fused fc: (part1 + part2) @ fc_W.T + fc_b, with the part1 term already
    # folded into bias_ref by the wrapper.  MXU matmul, f32 accumulation.
    out_ref[...] = (
        jnp.dot(part2, fcw_ref[...], preferred_element_type=jnp.float32)
        + bias_ref[...]
    )


def custom_cifar10_forward(x_nchw, params, *, tile_b=None):
    a, b, fc_w, fc_b, w_vec, n_vec = (
        params["a"], params["b"], params["fc_w"], params["fc_b"],
        params["w"], params["n"],
    )
    bsz = x_nchw.shape[0]
    d = a.shape[0]
    kf = a.shape[-1]
    c = fc_w.shape[0]

    x_flat = x_nchw.reshape(bsz, -1).astype(jnp.float32)   # same as torch .view
    assert x_flat.shape[1] == d, "hidden_dim must equal flattened input size"

    # Padding: batch to a multiple of 8 (f32 sublane), classes to 128 lanes.
    b_pad = -(-bsz // 8) * 8
    c_pad = -(-c // 128) * 128

    x_p = jnp.zeros((b_pad, d), jnp.float32).at[:bsz].set(x_flat)

    # --- x-independent weight precompute (hoisted out of the kernel) -------
    # a_sum[m, j] = sum_i a[i, j, m];  b_sum likewise.  [k, D] each, tiny.
    a_sum = jnp.sum(a.astype(jnp.float32), axis=0).T       # [D, k] -> [k, D]
    b_sum = jnp.sum(b.astype(jnp.float32), axis=0).T

    # fc weight transposed + lane-padded ([C, D] -> [D, C_PAD]).
    fcw_t = jnp.zeros((d, c_pad), jnp.float32).at[:, :c].set(
        fc_w.T.astype(jnp.float32))
    fcb_p = jnp.zeros((1, c_pad), jnp.float32).at[0, :c].set(
        fc_b.astype(jnp.float32))

    # part1 (scalar over the n-element vectors) folded into an effective bias:
    #   (part1 + part2) @ fcwT + fcb == part2 @ fcwT + part1 * colsum(fcwT) + fcb
    w32 = w_vec.astype(jnp.float32)
    n32 = n_vec.astype(jnp.float32)
    part1 = jnp.sum(w32[1:] * n32[1:] + w32[:-1] * n32[:-1])
    bias_eff = part1 * jnp.sum(fcw_t, axis=0, keepdims=True) + fcb_p  # [1, C_PAD]

    tb = tile_b if tile_b is not None else _pick_tile_b(b_pad)
    if b_pad % tb != 0 or tb % 8 != 0:
        raise ValueError(f"tile_b={tb} must be a multiple of 8 dividing B_pad={b_pad}")
    grid = (b_pad // tb,)

    out_p = pl.pallas_call(
        model_kernel,
        out_shape=jax.ShapeDtypeStruct((b_pad, c_pad), jnp.float32),
        grid=grid,
        in_specs=[
            pl.BlockSpec((tb, d), lambda bi: (bi, 0)),        # x        [B_pad, D]
            pl.BlockSpec((kf, d), lambda bi: (0, 0)),         # a_sum    [K, D]
            pl.BlockSpec((kf, d), lambda bi: (0, 0)),         # b_sum    [K, D]
            pl.BlockSpec((d, c_pad), lambda bi: (0, 0)),      # fcw_t    [D, C_PAD]
            pl.BlockSpec((1, c_pad), lambda bi: (0, 0)),      # bias_eff [1, C_PAD]
        ],
        out_specs=pl.BlockSpec((tb, c_pad), lambda bi: (bi, 0)),
        compiler_params=pltpu.CompilerParams(
            dimension_semantics=("parallel",),                # batch axis, megacore-safe
            vmem_limit_bytes=32 * 1024 * 1024,                # ample; footprint is ~2 MB at D=3072
        ),
    )(x_p, a_sum, b_sum, fcw_t, bias_eff)

    return out_p[:bsz, :c]


def reference_forward(x_nchw, params):
    """Pure-JAX reference mirroring the PyTorch forward() literally."""
    a, b, fc_w, fc_b, w_vec, n_vec = (
        params["a"], params["b"], params["fc_w"], params["fc_b"],
        params["w"], params["n"],
    )
    bsz = x_nchw.shape[0]
    k_f = a.shape[-1]
    x = x_nchw.reshape(bsz, -1)
    part1 = 0.0
    for i in range(1, int(w_vec.shape[0])):
        part1 = part1 + w_vec[i] * n_vec[i] + w_vec[i - 1] * n_vec[i - 1]
    m = jnp.arange(1, k_f + 1, dtype=jnp.float32)
    cos_part = jnp.cos(x[:, :, None] * m)                      # [B, D, K]
    sin_part = jnp.sin(x[:, :, None] * m)
    cos_part = cos_part[:, None, :, :] * a                     # [B, D, D, K]
    sin_part = sin_part[:, None, :, :] * b
    result = cos_part.sum(-1) + sin_part.sum(-1)                # [B, D, D]
    part2 = result.sum(axis=1)                                  # [B, D]
    z = part1 + part2
    return z @ fc_w.T + fc_b


if __name__ == "__main__":
    key = jax.random.PRNGKey(0)
    kx, ka, kb, kw, kn, kfw, kfb = jax.random.split(key, 7)

    # Small shapes consistent with the module: 3-channel image, D = 3*H*W,
    # hidden_dim == D, 10 classes, n == 5, FourierFeature default k == 1.
    BATCH, CH, H, W = 2, 3, 8, 16
    D = CH * H * W            # 384
    NUM_CLASSES = 10
    N_PARAM = 5
    K_FOURIER = 1

    x = jax.random.normal(kx, (BATCH, CH, H, W), dtype=jnp.float32)
    params = {
        "a": jax.random.normal(ka, (D, D, K_FOURIER), dtype=jnp.float32),
        "b": jax.random.normal(kb, (D, D, K_FOURIER), dtype=jnp.float32),
        "w": jax.random.normal(kw, (N_PARAM,), dtype=jnp.float32),
        "n": jax.random.normal(kn, (N_PARAM,), dtype=jnp.float32),
        "fc_w": jax.random.normal(kfw, (NUM_CLASSES, D), dtype=jnp.float32) * 0.02,
        "fc_b": jax.random.normal(kfb, (NUM_CLASSES,), dtype=jnp.float32),
    }

    out = jax.block_until_ready(custom_cifar10_forward(x, params))
    ref = jax.block_until_ready(reference_forward(x, params))
    np.testing.assert_allclose(np.asarray(out), np.asarray(ref), rtol=1e-3, atol=5e-3)

    print("KERNEL_OK")
</pallas_src>

<mosaic_0001>
module attributes {stable_mosaic.version = 11 : i64} {
  func.func @model_kernel(%arg0: i32, %arg1: memref<8x384xf32, #tpu.memory_space<vmem>>, %arg2: memref<1x384xf32, #tpu.memory_space<vmem>>, %arg3: memref<1x384xf32, #tpu.memory_space<vmem>>, %arg4: memref<384x128xf32, #tpu.memory_space<vmem>>, %arg5: memref<1x128xf32, #tpu.memory_space<vmem>>, %arg6: memref<8x128xf32, #tpu.memory_space<vmem>>) attributes {dimension_semantics = [#tpu.dimension_semantics<parallel>], iteration_bounds = array<i64: 1>, scalar_prefetch = 0 : i64, scratch_operands = 0 : i64, tpu.core_type = #tpu.core_type<tc>, window_params = [{transform_indices = @transform_0, window_bounds = array<i64: 8, 384>}, {pipeline_mode = #tpu.pipeline_mode<synchronous>, transform_indices = @transform_1, window_bounds = array<i64: 1, 384>}, {pipeline_mode = #tpu.pipeline_mode<synchronous>, transform_indices = @transform_2, window_bounds = array<i64: 1, 384>}, {pipeline_mode = #tpu.pipeline_mode<synchronous>, transform_indices = @transform_3, window_bounds = array<i64: 384, 128>}, {pipeline_mode = #tpu.pipeline_mode<synchronous>, transform_indices = @transform_4, window_bounds = array<i64: 1, 128>}, {transform_indices = @transform_5, window_bounds = array<i64: 8, 128>}]} {
    %c0 = arith.constant 0 : index
    %c0_0 = arith.constant 0 : index
    %0 = vector.load %arg1[%c0, %c0_0] : memref<8x384xf32, #tpu.memory_space<vmem>>, vector<8x384xf32>
    %cst = arith.constant 0.000000e+00 : f32
    %1 = vector.broadcast %cst : f32 to vector<8x384xf32>
    %2 = math.cos %0 : vector<8x384xf32>
    %c0_1 = arith.constant 0 : index
    %c0_2 = arith.constant 0 : index
    %3 = vector.load %arg2[%c0_1, %c0_2] : memref<1x384xf32, #tpu.memory_space<vmem>>, vector<1x384xf32>
    %4 = vector.broadcast %3 : vector<1x384xf32> to vector<8x384xf32>
    %5 = arith.mulf %2, %4 : vector<8x384xf32>
    %6 = arith.addf %1, %5 : vector<8x384xf32>
    %7 = math.sin %0 : vector<8x384xf32>
    %c0_3 = arith.constant 0 : index
    %c0_4 = arith.constant 0 : index
    %8 = vector.load %arg3[%c0_3, %c0_4] : memref<1x384xf32, #tpu.memory_space<vmem>>, vector<1x384xf32>
    %9 = vector.broadcast %8 : vector<1x384xf32> to vector<8x384xf32>
    %10 = arith.mulf %7, %9 : vector<8x384xf32>
    %11 = arith.addf %6, %10 : vector<8x384xf32>
    %c0_5 = arith.constant 0 : index
    %c0_6 = arith.constant 0 : index
    %12 = vector.load %arg4[%c0_5, %c0_6] : memref<384x128xf32, #tpu.memory_space<vmem>>, vector<384x128xf32>
    %cst_7 = arith.constant dense<0.000000e+00> : vector<8x128xf32>
    %13 = tpu.matmul %11, %12, %cst_7 {dimension_numbers = #tpu.dot_dimension_numbers<[1], [0], [0], [1], [0, 0, 1, 1], [], []>} : vector<8x384xf32>, vector<384x128xf32>, vector<8x128xf32> -> vector<8x128xf32>
    %c0_8 = arith.constant 0 : index
    %c0_9 = arith.constant 0 : index
    %14 = vector.load %arg5[%c0_8, %c0_9] : memref<1x128xf32, #tpu.memory_space<vmem>>, vector<1x128xf32>
    %15 = vector.broadcast %14 : vector<1x128xf32> to vector<8x128xf32>
    %16 = arith.addf %13, %15 : vector<8x128xf32>
    %c0_10 = arith.constant 0 : index
    %c0_11 = arith.constant 0 : index
    %17 = vector.load %arg6[%c0_10, %c0_11] : memref<8x128xf32, #tpu.memory_space<vmem>>, vector<8x128xf32>
    tpu.vector_store %arg6[%c0_10, %c0_11], %16 {strides = array<i32>} : memref<8x128xf32, #tpu.memory_space<vmem>>, vector<8x128xf32>,
    return
  }
  func.func @transform_0(%arg0: i32) -> (i32, i32) {
    %c0_i32 = arith.constant 0 : i32
    %c0_i32_0 = arith.constant 0 : i32
    return %arg0, %c0_i32 : i32, i32
  }
  func.func @transform_1(%arg0: i32) -> (i32, i32) {
    %c0_i32 = arith.constant 0 : i32
    %c0_i32_0 = arith.constant 0 : i32
    %c0_i32_1 = arith.constant 0 : i32
    return %c0_i32, %c0_i32_0 : i32, i32
  }
  func.func @transform_2(%arg0: i32) -> (i32, i32) {
    %c0_i32 = arith.constant 0 : i32
    %c0_i32_0 = arith.constant 0 : i32
    %c0_i32_1 = arith.constant 0 : i32
    return %c0_i32, %c0_i32_0 : i32, i32
  }
  func.func @transform_3(%arg0: i32) -> (i32, i32) {
    %c0_i32 = arith.constant 0 : i32
    %c0_i32_0 = arith.constant 0 : i32
    %c0_i32_1 = arith.constant 0 : i32
    return %c0_i32, %c0_i32_0 : i32, i32
  }
  func.func @transform_4(%arg0: i32) -> (i32, i32) {
    %c0_i32 = arith.constant 0 : i32
    %c0_i32_0 = arith.constant 0 : i32
    %c0_i32_1 = arith.constant 0 : i32
    return %c0_i32, %c0_i32_0 : i32, i32
  }
  func.func @transform_5(%arg0: i32) -> (i32, i32) {
    %c0_i32 = arith.constant 0 : i32
    %c0_i32_0 = arith.constant 0 : i32
    return %arg0, %c0_i32 : i32, i32
  }
}

</mosaic_0001>

<bundles_post_ra>
// kernel: tpu_custom_call.1
= control target key start
LH: loop header
LB: loop body
LE: loop exit
PB: predicated region body
PF: predicated region fallthrough
CT: control target
= control target key end

     0   :  { %10 = vsyncpa [#allocation3], 0  ;;  %s1476_s0 = inlined_call_operand.hbm [shape: f32[8,384], index: 0, kind: input, shape index: {}]   ;;  %s1477_s1 = inlined_call_operand.hbm [shape: f32[1,384], index: 1, kind: input, shape index: {}]   ;;  %s1478_s2 = inlined_call_operand.vmem [shape: f32[1,384], index: 2, kind: input, shape index: {}]   ;;  %s1479_s3 = inlined_call_operand.hbm [shape: f32[384,128], index: 3, kind: input, shape index: {}]   ;;  %s1480_s4 = inlined_call_operand.vmem [shape: f32[1,128], index: 4, kind: input, shape index: {}]   ;;  %s1481_s5 = inlined_call_operand.hbm [shape: f32[8,128], index: 5, kind: output, shape index: {}]  }
   0x1   :  { %11 = vsyncpa [#allocation6], 0 }
   0x2   :  { %12 = vsyncpa [#allocation4], 0  ;;  %s1176_s18 = smov [#allocation5]   ;;  %s1177_s20 = smov [#allocation2]  }
   0x3   :  { %s29_s19 = sshll.u32 %s1176_s18, 4  ;;  %s19_s21 = sshll.u32 %s1177_s20, 4  ;;  %s30_s19 = int_to_ptr.vmem [resolvable:$true] %s29_s19  ;;  %s20_s21 = int_to_ptr.vmem [resolvable:$true] %s19_s21 }
   0x4   :  { %s1098_s22 = scalar_lea.vmem %s30_s19, 48  ;;  %s1102_s23 = scalar_lea.vmem %s30_s19, 64 }
   0x5   :  { %p1099_p0 = scmp.ne.s32.totalorder %s30_s19, %s1098_s22  ;;  %p1103_p1 = scmp.lt.s32.totalorder %s30_s19, %s30_s19 }
   0x6   :  { %p1104_p2 = scmp.lt.s32.totalorder %s1102_s23, %s1098_s22 }
   0x8   :  { %p1105_p3 = por %p1104_p2, %p1103_p1 }
   0xa   :  { %p1106_p4 = pnand %p1105_p3, %p1099_p0 }
   0xc   :  { %1109 = shalt.err (!%p1106_p4)
}
   0xd   :  { %32 = dma.hbm_to_vmem [thread:$0]  %s1477_s1, 48, %s30_s19, [#allocation6]  }
   0xe   :  { %s1118_s26 = scalar_lea.vmem %s20_s21, 384  ;;  %p1123_p6 = scmp.lt.s32.totalorder %s20_s21, %s20_s21 }
   0xf   :  { %p1119_p5 = scmp.ne.s32.totalorder %s20_s21, %s1118_s26  ;;  %p1124_p7 = scmp.lt.s32.totalorder %s1118_s26, %s1118_s26 }
  0x11   :  { %p1125_p8 = por %p1124_p7, %p1123_p6 }
  0x13   :  { %p1126_p9 = pnand %p1125_p8, %p1119_p5 }
  0x15   :  { %1129 = shalt.err (!%p1126_p9)
}
  0x16   :  { %22 = dma.hbm_to_vmem [thread:$0]  %s1476_s0, 384, %s20_s21, [#allocation3]  }
  0x17   :  { %s1178_s29 = smov [#allocation7]  }
  0x18   :  { %s40_s30 = sshll.u32 %s1178_s29, 4  ;;  %s41_s30 = int_to_ptr.vmem [resolvable:$true] %s40_s30 }
  0x19   :  { %s1138_s6 = scalar_lea.vmem %s41_s30, 6144  ;;  %p1143_p11 = scmp.lt.s32.totalorder %s41_s30, %s41_s30 }
  0x1a   :  { %p1139_p10 = scmp.ne.s32.totalorder %s41_s30, %s1138_s6  ;;  %p1144_p12 = scmp.lt.s32.totalorder %s1138_s6, %s1138_s6 }
  0x1c   :  { %p1145_p13 = por %p1144_p12, %p1143_p11 }
  0x1e   :  { %p1146_p0 = pnand %p1145_p13, %p1139_p10 }
  0x20   :  { %1149 = shalt.err (!%p1146_p0)
}
  0x21   :  { %s1179_s1 = smov 128   ;;  %s1180_s7 = smov 8  }
  0x22   :  { %46 = dma.hbm_to_vmem [thread:$0]  %s1479_s3, 6144, %s41_s30, [#allocation6], %s1179_s1, %s1179_s1, %s1180_s7  }
  0x23   :  { %1170 = dma.done.wait [#allocation3], 384  }
  0x24   :  { %1171 = vsyncadd [#allocation3], 4294966912 }
  0x25   :  { %1172 = dma.done.wait [#allocation6], 6192  }
  0x26   :  { %1173 = vsyncadd [#allocation6], 4294961104  ;;  %v1181_v0 = vmov 0.0   ;;  %vm1182_vm0 = vmmov 0   ;;  %v759_v1 = vld [vmem:[#allocation7 + $0xf8] sm:$0xff]  ;;  %v758_v3 = vld [vmem:[#allocation7 + $0xf0] sm:$0xff] }
  0x27   :  { %1017 = vmatprep.subr.mxu1 %v1181_v0  ;;  %1049 = vmatprep.mubr.msk.f32.mxu1 %vm1182_vm0, %v1181_v0  ;;  %v743_v2 = vld [vmem:[#allocation7 + $0x78] sm:$0xff]  ;;  %v742_v4 = vld [vmem:[#allocation7 + $0x70] sm:$0xff]  ;;  %v757_v5 = vld [vmem:[#allocation7 + $0xe8] sm:$0xff]  ;;  %s1189_s11 = smov [#allocation8]  }
  0x28   :  { %965 = vmatprep.subr.mxu0 %v759_v1  ;;  %v775_v6 = vld [vmem:[#allocation7 + $0x178] sm:$0xff]  ;;  %v741_v7 = vld [vmem:[#allocation7 + $0x68] sm:$0xff]  ;;  %v774_v8 = vld [vmem:[#allocation7 + $0x170] sm:$0xff]  ;;  %s930_s12 = sshll.u32 %s1189_s11, 4  ;;  %s931_s12 = int_to_ptr.vmem [resolvable:$true] %s930_s12 }
  0x29   :  { %966 = vmatpush3.msra.mxu0 %v743_v2  ;;  %1018 = vmatpush3.msra.mxu1 %v775_v6  ;;  %v756_v9 = vld [vmem:[#allocation7 + $0xe0] sm:$0xff]  ;;  %v773_v10 = vld [vmem:[#allocation7 + $0x168] sm:$0xff]  ;;  %v755_v12 = vld [vmem:[#allocation7 + $0xd8] sm:$0xff]  ;;  %s1150_s13 = scalar_lea.vmem %s931_s12, 128  ;;  %p1155_p2 = scmp.lt.s32.totalorder %s931_s12, %s931_s12 }
  0x2a   :  { %967 = vmatprep.subr.mxu0 %v758_v3  ;;  %1019 = vmatprep.subr.mxu1 %v1181_v0  ;;  %v740_v11 = vld [vmem:[#allocation7 + $0x60] sm:$0xff]  ;;  %v739_v14 = vld [vmem:[#allocation7 + $0x58] sm:$0xff]  ;;  %v754_v15 = vld [vmem:[#allocation7 + $0xd0] sm:$0xff]  ;;  %p1151_p1 = scmp.ne.s32.totalorder %s931_s12, %s1150_s13  ;;  %p1156_p3 = scmp.lt.s32.totalorder %s1150_s13, %s1150_s13 }
  0x2b   :  { %968 = vmatpush3.msra.mxu0 %v742_v4  ;;  %1020 = vmatpush3.msra.mxu1 %v774_v8  ;;  %v772_v13 = vld [vmem:[#allocation7 + $0x160] sm:$0xff]  ;;  %v771_v16 = vld [vmem:[#allocation7 + $0x158] sm:$0xff]  ;;  %v738_v17 = vld [vmem:[#allocation7 + $0x50] sm:$0xff] }
  0x2c   :  { %969 = vmatprep.subr.mxu0 %v757_v5  ;;  %1021 = vmatprep.subr.mxu1 %v1181_v0  ;;  %v753_v18 = vld [vmem:[#allocation7 + $0xc8] sm:$0xff]  ;;  %v770_v19 = vld [vmem:[#allocation7 + $0x150] sm:$0xff]  ;;  %v752_v21 = vld [vmem:[#allocation7 + $0xc0] sm:$0xff]  ;;  %p1157_p4 = por %p1156_p3, %p1155_p2 }
  0x2d   :  { %970 = vmatpush3.msra.mxu0 %v741_v7  ;;  %1022 = vmatpush3.msra.mxu1 %v773_v10  ;;  %v737_v20 = vld [vmem:[#allocation7 + $0x48] sm:$0xff]  ;;  %v736_v23 = vld [vmem:[#allocation7 + $0x40] sm:$0xff]  ;;  %v751_v24 = vld [vmem:[#allocation7 + $0xb8] sm:$0xff]  ;;  %v1183_v10 = vmov 683565275  }
  0x2e   :  { %971 = vmatprep.subr.mxu0 %v756_v9  ;;  %1023 = vmatprep.subr.mxu1 %v1181_v0  ;;  %v769_v22 = vld [vmem:[#allocation7 + $0x148] sm:$0xff]  ;;  %v768_v25 = vld [vmem:[#allocation7 + $0x140] sm:$0xff]  ;;  %v735_v26 = vld [vmem:[#allocation7 + $0x38] sm:$0xff]  ;;  %p1158_p5 = pnand %p1157_p4, %p1151_p1 }
  0x2f   :  { %972 = vmatpush3.msra.mxu0 %v740_v11  ;;  %1024 = vmatpush3.msra.mxu1 %v772_v13  ;;  %v1237_v27 = vld [vmem:[#allocation2 + $0x8] sm:$0xff]  ;;  %v767_v29 = vld [vmem:[#allocation7 + $0x138] sm:$0xff]  ;;  %v1242_v32 = vld [vmem:[#allocation2] sm:$0xff] }
  0x30   :  { %973 = vmatprep.subr.mxu0 %v755_v12  ;;  %1025 = vmatprep.subr.mxu1 %v1181_v0  ;;  %v750_v28 = vld [vmem:[#allocation7 + $0xb0] sm:$0xff]  ;;  %v164_v30 = vand.u32 2147483647, %v1237_v27  ;;  %v167_v31 = vand.u32 2139095040, %v1237_v27  ;;  %v61_v34 = vand.u32 2147483647, %v1242_v32 }
  0x31   :  { %974 = vmatpush3.msra.mxu0 %v739_v14  ;;  %1026 = vmatpush3.msra.mxu1 %v771_v16  ;;  %v734_v33 = vld [vmem:[#allocation7 + $0x30] sm:$0xff]  ;;  %v749_v35 = vld [vmem:[#allocation7 + $0xa8] sm:$0xff]  ;;  %v64_v38 = vand.u32 2139095040, %v1242_v32  ;;  %v748_v43 = vld [vmem:[#allocation7 + $0xa0] sm:$0xff]  ;;  %v1184_v12 = vmov 2475754826  }
  0x32   :  { %975 = vmatprep.subr.mxu0 %v754_v15  ;;  %1027 = vmatprep.subr.mxu1 %v1181_v0  ;;  %v766_v36 = vld [vmem:[#allocation7 + $0x130] sm:$0xff]  ;;  %v168_v37 = vshrl.u32 %v167_v31, 23  ;;  %v733_v40 = vld [vmem:[#allocation7 + $0x28] sm:$0xff]  ;;  %v171_v41 = vand.u32 8388607, %v164_v30  ;;  %v732_v47 = vld [vmem:[#allocation7 + $0x20] sm:$0xff] }
  0x33   :  { %976 = vmatpush3.msra.mxu0 %v738_v17  ;;  %1028 = vmatpush3.msra.mxu1 %v770_v19  ;;  %v1247_v39 = vld [vmem:[#allocation2 + $0x10] sm:$0xff]  ;;  %v68_v42 = vand.u32 8388607, %v61_v34  ;;  %v765_v44 = vld [vmem:[#allocation7 + $0x128] sm:$0xff]  ;;  %v65_v46 = vshrl.u32 %v64_v38, 23  ;;  %v764_v50 = vld [vmem:[#allocation7 + $0x120] sm:$0xff] }
  0x34   :  { %977 = vmatprep.subr.mxu0 %v753_v18  ;;  %1029 = vmatprep.subr.mxu1 %v1181_v0  ;;  %v944_v45 = vadd.s32 4294967169, %v168_v37  ;;  %v270_v48 = vand.u32 2139095040, %v1247_v39  ;;  %v747_v49 = vld [vmem:[#allocation7 + $0x98] sm:$0xff]  ;;  %v172_v54 = vor.u32 8388608, %v171_v41  ;;  %v746_v57 = vld [vmem:[#allocation7 + $0x90] sm:$0xff]  ;;  %v745_v63 = vld [vmem:[#allocation7 + $0x88] sm:$0xff] }
  0x35   :  { %978 = vmatpush3.msra.mxu0 %v737_v20  ;;  %1030 = vmatpush3.msra.mxu1 %v769_v22  ;;  %v940_v52 = vadd.s32 4294967169, %v65_v46  ;;  %v731_v53 = vld [vmem:[#allocation7 + $0x18] sm:$0xff]  ;;  %v69_v55 = vor.u32 8388608, %v68_v42  ;;  %v730_v60 = vld [vmem:[#allocation7 + $0x10] sm:$0xff]  ;;  %v729_v4 = vld [vmem:[#allocation7 + $0x8] sm:$0xff] }
  0x36   :  { %979 = vmatprep.subr.mxu0 %v752_v21  ;;  %1031 = vmatprep.subr.mxu1 %v1181_v0  ;;  %v174_v51 = vadd.s32 1, %v944_v45  ;;  %v271_v56 = vshrl.u32 %v270_v48, 23  ;;  %v763_v58 = vld [vmem:[#allocation7 + $0x118] sm:$0xff]  ;;  %v762_v3 = vld [vmem:[#allocation7 + $0x110] sm:$0xff]  ;;  %v1260_v5 = vshll.u32 %v172_v54, 8  ;;  %v744_v8 = vld [vmem:[#allocation7 + $0x80] sm:$0xff] }
  0x37   :  { %980 = vmatpush3.msra.mxu0 %v736_v23  ;;  %1032 = vmatpush3.msra.mxu1 %v768_v25  ;;  %v71_v59 = vadd.s32 1, %v940_v52  ;;  %v1262_v7 = vshll.u32 %v69_v55, 8  ;;  %v1185_v14 = vmov 2131351028   ;;  %v728_v16 = vld [vmem:[#allocation7] sm:$0xff]  ;;  %v761_v21 = vld [vmem:[#allocation7 + $0x108] sm:$0xff] }
  0x38   :  { %981 = vmatprep.subr.mxu0 %v751_v24  ;;  %1033 = vmatprep.subr.mxu1 %v1181_v0  ;;  %vm175_vm1 = vcmp.gt.s32.totalorder %v174_v51, 0  ;;  %v948_v62 = vadd.s32 4294967169, %v271_v56  ;;  %v1186_v17 = vmov 2102212464   ;;  %v1187_v19 = vmov 920167782  }
  0x39   :  { %982 = vmatpush3.msra.mxu0 %v735_v26  ;;  %1034 = vmatpush3.msra.mxu1 %v767_v29  ;;  %v176_v61 = vsel %vm175_vm1, %v174_v51, 0  ;;  %vm72_vm2 = vcmp.gt.s32.totalorder %v71_v59, 0  ;;  %v1188_v29 = vmov 1326507024  }
  0x3a   :  { %983 = vmatprep.subr.mxu0 %v750_v28  ;;  %1035 = vmatprep.subr.mxu1 %v1181_v0  ;;  %v1258_v1 = vshrl.u32 %v176_v61, 5  ;;  %v178_v2 = vand.u32 31, %v176_v61  ;;  %v73_v6 = vsel %vm72_vm2, %v71_v59, 0  ;;  %v1271_v22 = vadd.s32 1, %v948_v62 }
  0x3b   :  { %984 = vmatpush3.msra.mxu0 %v734_v33  ;;  %1036 = vmatpush3.msra.mxu1 %v766_v36  ;;  %v760_v33 = vld [vmem:[#allocation7 + $0x100] sm:$0xff]  ;;  %v74_v41 = vshrl.u32 %v73_v6, 5  ;;  %v75_v42 = vand.u32 31, %v73_v6 }
  0x3c   :  { %985 = vmatprep.subr.mxu0 %v749_v35  ;;  %1037 = vmatprep.subr.mxu1 %v1181_v0  ;;  %v179_v9 = vsub.s32 32, %v178_v2  ;;  %v181_v11 = vshll.u32 %v1183_v10, %v178_v2  ;;  %v184_v13 = vshll.u32 %v1184_v12, %v178_v2  ;;  %v187_v15 = vshll.u32 %v1185_v14, %v178_v2 }
  0x3d   :  { %986 = vmatpush3.msra.mxu0 %v733_v40  ;;  %1038 = vmatpush3.msra.mxu1 %v765_v44  ;;  %v190_v18 = vshll.u32 %v1186_v17, %v178_v2  ;;  %v193_v20 = vshll.u32 %v1187_v19, %v178_v2  ;;  %vm196_vm3 = vcmp.lt.s32.totalorder %v1258_v1, 1  ;;  %vm197_vm4 = vcmp.lt.s32.totalorder %v1258_v1, 2 }
  0x3e   :  { %987 = vmatprep.subr.mxu0 %v748_v43  ;;  %1039 = vmatprep.subr.mxu1 %v1181_v0  ;;  %v180_v23 = vshrl.u32 %v1183_v10, %v179_v9  ;;  %v182_v24 = vshrl.u32 %v1184_v12, %v179_v9  ;;  %v185_v25 = vshrl.u32 %v1185_v14, %v179_v9  ;;  %vm198_vm5 = vcmp.lt.s32.totalorder %v1258_v1, 3 }
  0x3f   :  { %988 = vmatpush3.msra.mxu0 %v732_v47  ;;  %1040 = vmatpush3.msra.mxu1 %v764_v50  ;;  %v188_v26 = vshrl.u32 %v1186_v17, %v179_v9  ;;  %v191_v28 = vshrl.u32 %v1187_v19, %v179_v9  ;;  %v194_v31 = vshrl.u32 %v1188_v29, %v179_v9  ;;  %vm199_vm6 = vcmp.lt.s32.totalorder %v1258_v1, 4 }
  0x40   :  { %989 = vmatprep.subr.mxu0 %v747_v49  ;;  %1041 = vmatprep.subr.mxu1 %v1181_v0  ;;  %v183_v35 = vor.u32 %v182_v24, %v181_v11  ;;  %v186_v36 = vor.u32 %v185_v25, %v184_v13  ;;  %v76_v50 = vsub.s32 32, %v75_v42  ;;  %v84_v2 = vshll.u32 %v1185_v14, %v75_v42 }
  0x41   :  { %990 = vmatpush3.msra.mxu0 %v731_v53  ;;  %1042 = vmatpush3.msra.mxu1 %v763_v58  ;;  %v189_v37 = vor.u32 %v188_v26, %v187_v15  ;;  %v192_v38 = vor.u32 %v191_v28, %v190_v18  ;;  %v195_v40 = vor.u32 %v194_v31, %v193_v20  ;;  %vm93_vm7 = vcmp.lt.s32.totalorder %v74_v41, 1 }
  0x42   :  { %991 = vmatprep.subr.mxu0 %v746_v57  ;;  %1043 = vmatprep.subr.mxu1 %v1181_v0  ;;  %v200_v43 = vsel %vm196_vm3, %v180_v23, %v183_v35  ;;  %v204_v45 = vsel %vm196_vm3, %v183_v35, %v186_v36  ;;  %v78_v53 = vshll.u32 %v1183_v10, %v75_v42  ;;  %vm278_vm9 = vcmp.gt.s32.totalorder %v1271_v22, 0 }
  0x43   :  { %992 = vmatpush3.msra.mxu0 %v730_v60  ;;  %1044 = vmatpush3.msra.mxu1 %v762_v3  ;;  %v201_v44 = vsel %vm199_vm6, %v189_v37, 2102212464  ;;  %v208_v46 = vsel %vm196_vm3, %v186_v36, %v189_v37  ;;  %v205_v48 = vsel %vm199_vm6, %v192_v38, 920167782  ;;  %v209_v49 = vsel %vm199_vm6, %v195_v40, 1326507024 }
  0x44   :  { %993 = vmatprep.subr.mxu0 %v745_v63  ;;  %1045 = vmatprep.subr.mxu1 %v1181_v0  ;;  %v202_v47 = vsel %vm198_vm5, %v186_v36, %v201_v44  ;;  %v206_v51 = vsel %vm198_vm5, %v189_v37, %v205_v48  ;;  %v210_v52 = vsel %vm198_vm5, %v192_v38, %v209_v49  ;;  %vm94_vm10 = vcmp.lt.s32.totalorder %v74_v41, 2 }
  0x45   :  { %994 = vmatpush3.msra.mxu0 %v729_v4  ;;  %1046 = vmatpush3.msra.mxu1 %v761_v21  ;;  %v207_v54 = vsel %vm197_vm4, %v204_v45, %v206_v51  ;;  %v211_v55 = vsel %vm197_vm4, %v208_v46, %v210_v52  ;;  %v77_v57 = vshrl.u32 %v1183_v10, %v76_v50  ;;  %vm95_vm11 = vcmp.lt.s32.totalorder %v74_v41, 3 }
  0x46   :  { %995 = vmatprep.subr.mxu0 %v744_v8  ;;  %1047 = vmatprep.subr.mxu1 %v1181_v0  ;;  %v203_v0 = vsel %vm197_vm4, %v200_v43, %v202_v47  ;;  %v1306_v58 = vmul.u32.u64.low %v1260_v5, %v211_v55  ;;  %v1307_v59 = vmul.u32.u64.high %v1260_v5, %v211_v55, %v1306_v58  ;;  %v79_v62 = vshrl.u32 %v1184_v12, %v76_v50 }
  0x47   :  { %996 = vmatpush3.msra.mxu0 %v728_v16  ;;  %1048 = vmatpush3.msra.mxu1 %v760_v33  ;;  %v219_v56 = vmul.u32 %v1260_v5, %v203_v0  ;;  %v1310_v60 = vmul.u32.u64.low %v1260_v5, %v207_v54  ;;  %v1311_v61 = vmul.u32.u64.high %v1260_v5, %v207_v54, %v1310_v60  ;;  %v81_v63 = vshll.u32 %v1184_v12, %v75_v42 }
  0x48   :  { %v82_v1 = vshrl.u32 %v1185_v14, %v76_v50  ;;  %v85_v3 = vshrl.u32 %v1186_v17, %v76_v50  ;;  %v87_v4 = vshll.u32 %v1186_v17, %v75_v42  ;;  %v88_v6 = vshrl.u32 %v1187_v19, %v76_v50 }
  0x49   :  { %v90_v8 = vshll.u32 %v1187_v19, %v75_v42  ;;  %v80_v9 = vor.u32 %v79_v62, %v78_v53  ;;  %v91_v11 = vshrl.u32 %v1188_v29, %v76_v50  ;;  %vm221_vm8 = vc.u32 %v1307_v59, %v1310_v60 }
  0x4a   :  { %v83_v5 = vor.u32 %v82_v1, %v81_v63  ;;  %v222_v13 = vadd.s32 1, %v1311_v61  ;;  %v86_v15 = vor.u32 %v85_v3, %v84_v2  ;;  %v89_v16 = vor.u32 %v88_v6, %v87_v4 }
  0x4b   :  { %v92_v18 = vor.u32 %v91_v11, %v90_v8  ;;  %vm96_vm12 = vcmp.lt.s32.totalorder %v74_v41, 4  ;;  %v97_v21 = vsel %vm93_vm7, %v77_v57, %v80_v9  ;;  %v279_v40 = vsel %vm278_vm9, %v1271_v22, 0 }
  0x4c   :  { %v223_v20 = vsel %vm221_vm8, %v222_v13, %v1311_v61  ;;  %v101_v23 = vsel %vm93_vm7, %v80_v9, %v83_v5  ;;  %v98_v25 = vsel %vm96_vm12, %v86_v15, 2102212464  ;;  %v102_v26 = vsel %vm96_vm12, %v89_v16, 920167782 }
  0x4d   :  { %v224_v24 = vadd.s32 %v223_v20, %v219_v56  ;;  %v105_v28 = vsel %vm93_vm7, %v83_v5, %v86_v15  ;;  %v99_v31 = vsel %vm95_vm11, %v83_v5, %v98_v25  ;;  %v103_v33 = vsel %vm95_vm11, %v86_v15, %v102_v26 }
  0x4e   :  { %v106_v35 = vsel %vm96_vm12, %v92_v18, 1326507024  ;;  %v104_v37 = vsel %vm94_vm10, %v101_v23, %v103_v33  ;;  %v100_v42 = vsel %vm94_vm10, %v97_v21, %v99_v31  ;;  %v281_v49 = vand.u32 31, %v279_v40 }
  0x4f   :  { %v225_v36 = vadd.s32 536870912, %v224_v24  ;;  %v107_v38 = vsel %vm95_vm11, %v89_v16, %v106_v35  ;;  %v1338_v44 = vmul.u32.u64.low %v1262_v7, %v104_v37  ;;  %v1339_v45 = vmul.u32.u64.high %v1262_v7, %v104_v37, %v1338_v44 }
  0x50   :  { %v108_v43 = vsel %vm94_vm10, %v105_v28, %v107_v38  ;;  %v116_v22 = vmul.u32 %v1262_v7, %v100_v42  ;;  %v267_v51 = vand.u32 2147483647, %v1247_v39  ;;  %v282_v53 = vsub.s32 32, %v281_v49 }
  0x51   :  { %v1342_v46 = vshrl.u32 %v225_v36, 30  ;;  %v1345_v47 = vmul.u32.u64.low %v1262_v7, %v108_v43  ;;  %v1346_v48 = vmul.u32.u64.high %v1262_v7, %v108_v43, %v1345_v47  ;;  %v119_v0 = vadd.s32 1, %v1339_v45 }
  0x52   :  { %v274_v57 = vand.u32 8388607, %v267_v51  ;;  %v280_v58 = vshrl.u32 %v279_v40, 5  ;;  %v284_v7 = vshll.u32 %v1183_v10, %v281_v49  ;;  %v285_v62 = vshrl.u32 %v1184_v12, %v282_v53 }
  0x53   :  { %v227_v50 = vshll.u32 %v1342_v46, 30  ;;  %vm118_vm13 = vc.u32 %v1346_v48, %v1338_v44  ;;  %v287_v63 = vshll.u32 %v1184_v12, %v281_v49  ;;  %v288_v2 = vshrl.u32 %v1185_v14, %v282_v53 }
  0x54   :  { %v120_v52 = vsel %vm118_vm13, %v119_v0, %v1339_v45  ;;  %v293_v3 = vshll.u32 %v1186_v17, %v281_v49  ;;  %v294_v4 = vshrl.u32 %v1187_v19, %v282_v53  ;;  %v290_v8 = vshll.u32 %v1185_v14, %v281_v49 }
  0x55   :  { %v228_v41 = vsub.s32 %v224_v24, %v227_v50  ;;  %v121_v55 = vadd.s32 %v120_v52, %v116_v22  ;;  %v291_v9 = vshrl.u32 %v1186_v17, %v282_v53  ;;  %v220_v5 = vadd.s32 %v1310_v60, %v1307_v59 }
  0x56   :  { %v275_v13 = vor.u32 8388608, %v274_v57  ;;  %vm299_vm14 = vcmp.lt.s32.totalorder %v280_v58, 1  ;;  %v283_v15 = vshrl.u32 %v1183_v10, %v282_v53  ;;  %v296_v16 = vshll.u32 %v1187_v19, %v281_v49 }
  0x57   :  { %v230_v54 = vsub.s32 0, %v228_v41  ;;  %v122_v61 = vadd.s32 536870912, %v121_v55  ;;  %v297_v18 = vshrl.u32 %v1188_v29, %v282_v53  ;;  %v286_v20 = vor.u32 %v285_v62, %v284_v7 }
  0x58   :  { %v289_v21 = vor.u32 %v288_v2, %v287_v63  ;;  %v295_v14 = vor.u32 %v294_v4, %v293_v3  ;;  %v292_v24 = vor.u32 %v291_v9, %v290_v8  ;;  %vm302_vm0 = vcmp.lt.s32.totalorder %v280_v58, 4 }
  0x59   :  { %v945_v56 = vmin.u32 %v230_v54, %v228_v41  ;;  %v1363_v6 = vshrl.u32 %v122_v61, 30  ;;  %vm300_vm1 = vcmp.lt.s32.totalorder %v280_v58, 2  ;;  %v298_v28 = vor.u32 %v297_v18, %v296_v16 }
  0x5a   :  { %vm301_vm2 = vcmp.lt.s32.totalorder %v280_v58, 3  ;;  %v304_v10 = vsel %vm302_vm0, %v292_v24, 2102212464  ;;  %v307_v29 = vsel %vm299_vm14, %v286_v20, %v289_v21  ;;  %v308_v33 = vsel %vm302_vm0, %v295_v14, 920167782 }
  0x5b   :  { %v232_v1 = vclz %v945_v56  ;;  %v124_v12 = vshll.u32 %v1363_v6, 30  ;;  %v303_v36 = vsel %vm299_vm14, %v283_v15, %v286_v20  ;;  %v315_v37 = vshll.u32 %v275_v13, 8 }
  0x5c   :  { %v305_v42 = vsel %vm301_vm2, %v289_v21, %v304_v10  ;;  %v309_v43 = vsel %vm301_vm2, %v292_v24, %v308_v33  ;;  %v311_v49 = vsel %vm299_vm14, %v289_v21, %v292_v24  ;;  %v312_v50 = vsel %vm302_vm0, %v298_v28, 1326507024 }
  0x5d   :  { %v946_v11 = vadd.s32 4294967294, %v232_v1  ;;  %v125_v17 = vsub.s32 %v121_v55, %v124_v12  ;;  %v310_v47 = vsel %vm300_vm1, %v307_v29, %v309_v43  ;;  %v306_v52 = vsel %vm300_vm1, %v303_v36, %v305_v42  ;;  %v1434_v43 = vld [vmem:[#allocation5] sm:$0x7] }
  0x5e   :  { %v313_v53 = vsel %vm301_vm2, %v295_v14, %v312_v50  ;;  %v1385_v56 = vmul.u32.u64.low %v315_v37, %v310_v47  ;;  %v1386_v57 = vmul.u32.u64.high %v315_v37, %v310_v47, %v1385_v56  ;;  %v117_v61 = vadd.s32 %v1338_v44, %v1346_v48  ;;  %v1440_v47 = vld [vmem:[%s1478_s2] sm:$0x7] }
  0x5f   :  { %vm947_vm15 = vcmp.lt.s32.totalorder %v946_v11, 0  ;;  %v127_v26 = vsub.s32 0, %v125_v17  ;;  %v314_v55 = vsel %vm300_vm1, %v311_v49, %v313_v53  ;;  %vm166_vm4 = vcmp.lt.s32.totalorder %v1237_v27, 0 }
  0x60   :  { %v235_v23 = vsel %vm947_vm15, 0, %v946_v11  ;;  %v1391_v7 = vmul.u32.u64.low %v315_v37, %v314_v55  ;;  %v1392_v62 = vmul.u32.u64.high %v315_v37, %v314_v55, %v1391_v7  ;;  %v250_v1 = vsub.s32 4, %v1342_v46 }
  0x61   :  { %v236_v59 = vsub.s32 32, %v235_v23  ;;  %v237_v60 = vshll.u32 %v228_v41, %v235_v23  ;;  %v240_v25 = vsub.s32 4294967266, %v235_v23  ;;  %v941_v35 = vmin.u32 %v127_v26, %v125_v17 }
  0x62   :  { %v322_v8 = vmul.u32 %v315_v37, %v306_v52  ;;  %vm1398_vm5 = vcmp.le.f32.partialorder %v164_v30, 0.7853982  ;;  %v325_v48 = vadd.s32 1, %v1386_v57  ;;  %vm324_vm6 = vc.u32 %v1392_v62, %v1385_v56 }
  0x63   :  { %v238_v19 = vshrl.u32 %v220_v5, %v236_v59  ;;  %v241_v31 = vadd.s32 127, %v240_v25  ;;  %v129_v45 = vclz %v941_v35  ;;  %v251_v12 = vsel %vm166_vm4, %v250_v1, %v1342_v46 }
  0x64   :  { %v326_v30 = vsel %vm324_vm6, %v325_v48, %v1386_v57  ;;  %v372_v24 = vlaneseq  ;;  %vm63_vm7 = vcmp.lt.s32.totalorder %v1242_v32, 0  ;;  %v147_v10 = vsub.s32 4, %v1363_v6 }
  0x65   :  { %v239_v38 = vor.u32 %v238_v19, %v237_v60  ;;  %v242_v40 = vshll.u32 %v241_v31, 23  ;;  %v942_v41 = vadd.s32 4294967294, %v129_v45  ;;  %v327_v20 = vadd.s32 %v326_v30, %v322_v8 }
  0x66   :  { %v1419_v28 = vshrl.u32 %v372_v24, 7  ;;  %vm1425_vm8 = vcmp.le.f32.partialorder %v61_v34, 0.7853982  ;;  %vm256_vm9 = vweird.f32 %v1237_v27  ;;  %vm153_vm1 = vweird.f32 %v1242_v32 }
  0x67   :  { %v243_v22 = vor.u32 4788187, %v242_v40  ;;  %v246_v0 = vcvt.s32.f32 %v239_v38  ;;  %vm943_vm3 = vcmp.lt.s32.totalorder %v942_v41, 0  ;;  %v328_v23 = vadd.s32 536870912, %v327_v20 }
  0x68   :  { %v132_v2 = vsel %vm943_vm3, 0, %v942_v41  ;;  %v378_v38 = vsub.s32 1, %v1419_v28  ;;  %v148_v40 = vsel %vm63_vm7, %v147_v10, %v1363_v6 }
  0x69   :  { %v244_v54 = vand.u32 2147483647, %v243_v22  ;;  %v133_v3 = vsub.s32 32, %v132_v2  ;;  %v134_v58 = vshll.u32 %v125_v17, %v132_v2  ;;  %v137_v4 = vsub.s32 4294967266, %v132_v2 }
  0x6a   :  { %v253_v17 = vsel %vm1398_vm5, 0, %v251_v12  ;;  %v1416_v46 = vshrl.u32 %v328_v23, 30  ;;  %v150_v6 = vsel %vm1425_vm8, 0, %v148_v40  ;;  %v714_v55 = vrot.slane %v1440_v47, %v378_v38 }
  0x6b   :  { %v247_v63 = vmul.f32 %v246_v0, %v244_v54  ;;  %v135_v5 = vshrl.u32 %v117_v61, %v133_v3  ;;  %v138_v11 = vadd.s32 127, %v137_v4  ;;  %v590_v60 = vadd.s32 3, %v253_v17 }
  0x6c   :  { %v330_v26 = vshll.u32 %v1416_v46, 30  ;;  %v257_v33 = vand.u32 3, %v253_v17  ;;  %v379_v0 = vrot.slane %v1434_v43, %v378_v38  ;;  %v486_v57 = vadd.s32 3, %v150_v6 }
  0x6d   :  { %v248_v44 = vxor.u32 2147483648, %v247_v63  ;;  %v136_v16 = vor.u32 %v135_v5, %v134_v58  ;;  %v139_v18 = vshll.u32 %v138_v11, 23  ;;  %v591_v35 = vand.u32 3, %v590_v60 }
  0x6e   :  { %v331_v29 = vsub.s32 %v327_v20, %v330_v26  ;;  %vm262_vm10 = vcmp.eq.s32.totalorder %v257_v33, 2  ;;  %vm259_vm12 = vcmp.eq.s32.totalorder %v257_v33, 0  ;;  %vm258_vm14 = vcmp.lt.s32.totalorder %v257_v33, 2 }
  0x6f   :  { %v249_v13 = vsel %vm166_vm4, %v248_v44, %v247_v63  ;;  %v140_v21 = vor.u32 4788187, %v139_v18  ;;  %v143_v14 = vcvt.s32.f32 %v136_v16  ;;  %vm596_vm11 = vcmp.eq.s32.totalorder %v591_v35, 2 }
  0x70   :  { %v252_v15 = vsel %vm1398_vm5, %v1237_v27, %v249_v13  ;;  %v333_v37 = vsub.s32 0, %v331_v29  ;;  %vm593_vm13 = vcmp.eq.s32.totalorder %v591_v35, 0  ;;  %vm592_vm15 = vcmp.lt.s32.totalorder %v591_v35, 2 }
  0x71   :  { %1078 = vcosq.f32 %v252_v15  ;;  %v141_v59 = vand.u32 2147483647, %v140_v21  ;;  %v323_v63 = vadd.s32 %v1385_v56, %v1392_v62  ;;  %v154_v3 = vand.u32 3, %v150_v6 }
  0x72   :  { %1080 = vsinq.f32 %v252_v15  ;;  %v949_v34 = vmin.u32 %v333_v37, %v331_v29  ;;  %v487_v11 = vand.u32 3, %v486_v57  ;;  %v374_v62 = vsub.s32 0, %v1419_v28 }
  0x73   :  { %v144_v25 = vmul.f32 %v143_v14, %v141_v59  ;;  %vm159_vm2 = vcmp.eq.s32.totalorder %v154_v3, 2  ;;  %vm155_vm4 = vcmp.lt.s32.totalorder %v154_v3, 2  ;;  %vm156_vm5 = vcmp.eq.s32.totalorder %v154_v3, 0 }
  0x74   :  { %v335_v49 = vclz %v949_v34  ;;  %vm492_vm3 = vcmp.eq.s32.totalorder %v487_v11, 2  ;;  %vm489_vm6 = vcmp.eq.s32.totalorder %v487_v11, 0  ;;  %v375_v24 = vrot.slane %v1434_v43, %v374_v62 }
  0x75   :  { %v145_v31 = vxor.u32 2147483648, %v144_v25  ;;  %v710_v60 = vrot.slane %v1440_v47, %v374_v62  ;;  %v353_v38 = vsub.s32 4, %v1416_v46 }
  0x76   :  { %v950_v52 = vadd.s32 4294967294, %v335_v49 }
  0x77   :  { %v146_v36 = vsel %vm63_vm7, %v145_v31, %v144_v25  ;;  %vm488_vm7 = vcmp.lt.s32.totalorder %v487_v11, 2 }
  0x78   :  { %v149_v42 = vsel %vm1425_vm8, %v1242_v32, %v146_v36  ;;  %vm951_vm0 = vcmp.lt.s32.totalorder %v950_v52, 0  ;;  %vm269_vm8 = vcmp.lt.s32.totalorder %v1247_v39, 0 }
  0x79   :  { %1082 = vcosq.f32 %v149_v42  ;;  %v338_v58 = vsel %vm951_vm0, 0, %v950_v52 }
  0x7a   :  { %1084 = vsinq.f32 %v149_v42  ;;  %v339_v9 = vsub.s32 32, %v338_v58  ;;  %v340_v44 = vshll.u32 %v331_v29, %v338_v58  ;;  %v343_v13 = vsub.s32 4294967266, %v338_v58 }
  0x7c   :  { %v341_v12 = vshrl.u32 %v323_v63, %v339_v9  ;;  %v344_v56 = vadd.s32 127, %v343_v13 }
  0x7e   :  { %v1079_v45 = vpop.eup %1078  ;;  %v342_v15 = vor.u32 %v341_v12, %v340_v44  ;;  %v345_v27 = vshll.u32 %v344_v56, 23 }
  0x7f   :  { %v1081_v50 = vpop.eup %1080  ;;  %v263_v22 = vxor.u32 2147483648, %v1079_v45 }
  0x80   :  { %v260_v41 = vxor.u32 2147483648, %v1081_v50  ;;  %v346_v14 = vor.u32 4788187, %v345_v27  ;;  %v349_v23 = vcvt.s32.f32 %v342_v15 }
  0x81   :  { %v264_v53 = vsel %vm262_vm10, %v263_v22, %v1081_v50  ;;  %v598_v54 = vsel %vm596_vm11, %v263_v22, %v1081_v50 }
  0x82   :  { %v261_v61 = vsel %vm259_vm12, %v1079_v45, %v260_v41  ;;  %v595_v7 = vsel %vm593_vm13, %v1079_v45, %v260_v41  ;;  %v347_v10 = vand.u32 2147483647, %v346_v14  ;;  %v354_v45 = vsel %vm269_vm8, %v353_v38, %v1416_v46 }
  0x83   :  { %v265_v1 = vsel %vm258_vm14, %v261_v61, %v264_v53  ;;  %v599_v2 = vsel %vm592_vm15, %v595_v7, %v598_v54  ;;  %vm359_vm14 = vweird.f32 %v1247_v39 }
  0x84   :  { %v266_v4 = vsel %vm256_vm9, nan, %v265_v1  ;;  %v600_v8 = vsel %vm256_vm9, nan, %v599_v2  ;;  %v350_v35 = vmul.f32 %v349_v23, %v347_v10  ;;  %vm268_vm9 = vcmp.le.f32.partialorder %v267_v51, 0.7853982 }
  0x85   :  { %v388_v48 = vmul.f32 %v379_v0, %v266_v4  ;;  %v723_v5 = vmul.f32 %v714_v55, %v600_v8  ;;  %v356_v32 = vsel %vm268_vm9, 0, %v354_v45  ;;  %v382_v0 = vsub.s32 2, %v1419_v28 }
  0x86   :  { %v1083_v16 = vpop.eup %1082  ;;  %v351_v40 = vxor.u32 2147483648, %v350_v35  ;;  %v694_v49 = vadd.s32 3, %v356_v32  ;;  %v360_v50 = vand.u32 3, %v356_v32 }
  0x87   :  { %v726_v30 = vadd.f32 %v723_v5, %v388_v48  ;;  %v1085_v18 = vpop.eup %1084  ;;  %v160_v20 = vxor.u32 2147483648, %v1083_v16  ;;  %v383_v54 = vrot.slane %v1434_v43, %v382_v0  ;;  %v718_v57 = vrot.slane %v1440_v47, %v382_v0  ;;  %v964_v43 = vld [vmem:[%s1480_s4] ss:$0 sm:$0xff] }
  0x88   :  { %v157_v21 = vxor.u32 2147483648, %v1085_v18  ;;  %v352_v34 = vsel %vm269_vm8, %v351_v40, %v350_v35  ;;  %v695_v22 = vand.u32 3, %v694_v49  ;;  %vm365_vm10 = vcmp.eq.s32.totalorder %v360_v50, 2 }
  0x89   :  { %847 = vmatprep.mubr.f32.mxu0 %v726_v30  ;;  %v161_v17 = vsel %vm159_vm2, %v160_v20, %v1085_v18  ;;  %v494_v59 = vsel %vm492_vm3, %v160_v20, %v1085_v18  ;;  %v355_v6 = vsel %vm268_vm9, %v1247_v39, %v352_v34  ;;  %vm362_vm12 = vcmp.eq.s32.totalorder %v360_v50, 0 }
  0x8a   :  { %v158_v25 = vsel %vm156_vm5, %v1083_v16, %v157_v21  ;;  %v491_v26 = vsel %vm489_vm6, %v1083_v16, %v157_v21  ;;  %1086 = vcosq.f32 %v355_v6  ;;  %vm700_vm11 = vcmp.eq.s32.totalorder %v695_v22, 2 }
  0x8b   :  { %v162_v19 = vsel %vm155_vm4, %v158_v25, %v161_v17  ;;  %v495_v31 = vsel %vm488_vm7, %v491_v26, %v494_v59  ;;  %1088 = vsinq.f32 %v355_v6  ;;  %vm697_vm13 = vcmp.eq.s32.totalorder %v695_v22, 0 }
  0x8c   :  { %v163_v29 = vsel %vm153_vm1, nan, %v162_v19  ;;  %v496_v33 = vsel %vm153_vm1, nan, %v495_v31  ;;  %vm361_vm15 = vcmp.lt.s32.totalorder %v360_v50, 2  ;;  %vm696_vm0 = vcmp.lt.s32.totalorder %v695_v22, 2 }
  0x8d   :  { %v387_v36 = vmul.f32 %v375_v24, %v163_v29  ;;  %v722_v37 = vmul.f32 %v710_v60, %v496_v33 }
  0x8f   :  { %v725_v42 = vadd.f32 %v722_v37, %v387_v36 }
  0x91   :  { %848 = vmatmul.mubr.f32.vlgmr.msra.gmra.mxu0 %v725_v42 }
  0x97   :  { %v1087_v41 = vpop.eup %1086 }
  0x98   :  { %v1089_v51 = vpop.eup %1088  ;;  %v366_v52 = vxor.u32 2147483648, %v1087_v41 }
  0x99   :  { %v363_v46 = vxor.u32 2147483648, %v1089_v51 }
  0x9a   :  { %v367_v53 = vsel %vm365_vm10, %v366_v52, %v1089_v51  ;;  %v702_v55 = vsel %vm700_vm11, %v366_v52, %v1089_v51 }
  0x9b   :  { %v364_v61 = vsel %vm362_vm12, %v1087_v41, %v363_v46  ;;  %v699_v28 = vsel %vm697_vm13, %v1087_v41, %v363_v46 }
  0x9c   :  { %v368_v7 = vsel %vm361_vm15, %v364_v61, %v367_v53  ;;  %v703_v63 = vsel %vm696_vm0, %v699_v28, %v702_v55 }
  0x9d   :  { %v369_v1 = vsel %vm359_vm14, nan, %v368_v7  ;;  %v704_v2 = vsel %vm359_vm14, nan, %v703_v63 }
  0x9e   :  { %v389_v3 = vmul.f32 %v383_v54, %v369_v1  ;;  %v724_v58 = vmul.f32 %v718_v57, %v704_v2 }
  0xa0   :  { %v727_v4 = vadd.f32 %v724_v58, %v389_v3 }
  0xa2   :  { %1050 = vmatmul.mubr.f32.vlgmr.msra.gmra.mxu1 %v727_v4 }
 0x151   :  { %v997_v39 = vpop.f32.mrf.mxu0 }
 0x153   :  { %v998_v8 = vpop.f32.mrf.mxu0 }
 0x154   :  { %v999_v9 = vadd.f32 %v998_v8, %v997_v39 }
 0x156   :  { %v850_v44 = vadd.f32 %v999_v9, %v964_v43 }
 0x162   :  { %v919_v47 = vpop.f32.mrf.mxu1 }
 0x163   :  { %v920_v48 = vadd.f32 %v919_v47, %v850_v44 }
 0x164   :  { %v1051_v5 = vpop.f32.mrf.mxu1 }
 0x165   :  { %923 = vst [vmem:[#allocation8] sm:$0xff] %v920_v48 }
 0x166   :  { %1161 = shalt.err (!%p1158_p5)
}
 0x167   :  { %933 = dma.vmem_to_hbm [thread:$0]  %s931_s12, 128, %s1481_s5, [#allocation4]  }
 0x168   :  { %1174 = dma.done.wait [#allocation4], 128  }
 0x169   :  { %1175 = vsyncadd [#allocation4], 4294967168 }
 0x16a   :  { %937 = vsyncpa [#allocation3], 1 }
 0x16b   :  { %938 = vsyncpa [#allocation6], 1 }
 0x16c   :  { %939 = vsyncpa [#allocation4], 1 }

</bundles_post_ra>
